<compile_context>
chip_gen: v5e
topology: v5e:2x2
jax: 0.10.0
libtpu: 0.0.40
codegen_flags: <defaults>
</compile_context>

<pallas_src>
import functools
import math

import jax
import jax.numpy as jnp
from jax.experimental import pallas as pl
from jax.experimental.pallas import tpu as pltpu

BN_EPS = 1e-5
_CONTRACT_ROWS = (((0,), (0,)), ((), ()))  # lhs.T @ rhs without materializing .T
_VMEM_LIMIT = 48 * 1024 * 1024             # > 16/32 MiB defaults, < v7x's 64 MiB physical


def _stats_kernel(x_ref, w_ref, b_ref, s_ref, qsum_ref, *, dq, out_dim, n,
                  tile_n, tiles_per_split, mask_tail):
    """Pass A: accumulate merged sufficient statistics.

    proj columns are ordered [k | q_s | v] so that
        lhs = proj[:, :2*dq]            = [k | q_s]
        rhs = proj[:, dq:2*dq+out_dim]  = [q_s | v]
    and a single row-contraction S = lhs.T @ rhs holds
        k.T @ v  at S[0:dq, dq:]      and      q.T @ q  at S[dq:2dq, 0:dq].
    """
    h = pl.program_id(0)
    i = pl.program_id(1)

    @pl.when(i == 0)
    def _():
        s_ref[...] = jnp.zeros_like(s_ref)
        qsum_ref[...] = jnp.zeros_like(qsum_ref)

    proj = jnp.dot(x_ref[...], w_ref[...],
                   preferred_element_type=jnp.float32) + b_ref[...]

    if mask_tail:
        tile_idx = h * tiles_per_split + i
        row = tile_idx * tile_n + jax.lax.broadcasted_iota(
            jnp.int32, (tile_n, 1), 0)
        proj = jnp.where(row < n, proj, 0.0)

    lhs = proj[:, :2 * dq]                      # [k | q_s]
    rhs = proj[:, dq:2 * dq + out_dim]          # [q_s | v]
    s_ref[...] += jax.lax.dot_general(
        lhs, rhs, _CONTRACT_ROWS, preferred_element_type=jnp.float32)[None]
    # (1, 2dq) broadcasts onto the (1, 8, 2dq) replicated accumulator.
    qsum_ref[...] += jnp.sum(lhs, axis=0, keepdims=True)


def _out_kernel(x_ref, w_ref, b_ref, o_ref, *, half):
    """Pass B: one fused matmul; out = resid + relu(at_normalized)."""
    proj = jnp.dot(x_ref[...], w_ref[...],
                   preferred_element_type=jnp.float32) + b_ref[...]
    o_ref[...] = proj[:, half:] + jnp.maximum(proj[:, :half], 0.0)


def _pick_tile(n, max_tile):
    if n <= max_tile:
        return n                         # single block == full array dim
    return max(32, (max_tile // 32) * 32)  # keep packed tile (tile//4) sublane-aligned


def global_attention_head(x, packed, *, max_tile=8192):
    """x: (N, in_dim) f32.  packed: dict from pack_params()."""
    n, in_dim = x.shape
    dq = packed["wq_s"].shape[1]
    out_dim = packed["wr"].shape[1]

    tile_n = _pick_tile(n, max_tile)
    n_tiles = pl.cdiv(n, tile_n)
    splits = 2 if (n_tiles >= 2 and n_tiles % 2 == 0) else 1   # v7x core split
    tiles_per_split = n_tiles // splits
    mask_tail = (n % tile_n) != 0

    wstat = packed["wstat"]                  # (in_dim, 2dq+out_dim), [k | q_s | v]
    bstat = packed["bstat"]
    stat_cols = wstat.shape[1]

    # ---- Pass A: reduction over row tiles -> tiny sufficient statistics ----
    s_part, qsum_part = pl.pallas_call(
        functools.partial(_stats_kernel, dq=dq, out_dim=out_dim, n=n,
                          tile_n=tile_n, tiles_per_split=tiles_per_split,
                          mask_tail=mask_tail),
        grid=(splits, tiles_per_split),
        in_specs=[
            pl.BlockSpec((tile_n, in_dim),
                         lambda h, i: (h * tiles_per_split + i, 0)),
            pl.BlockSpec((in_dim, stat_cols), lambda h, i: (0, 0)),
            pl.BlockSpec((1, stat_cols), lambda h, i: (0, 0)),
        ],
        out_specs=(
            pl.BlockSpec((1, 2 * dq, dq + out_dim), lambda h, i: (h, 0, 0)),
            pl.BlockSpec((1, 8, 2 * dq), lambda h, i: (h, 0, 0)),
        ),
        out_shape=(
            jax.ShapeDtypeStruct((splits, 2 * dq, dq + out_dim), jnp.float32),
            jax.ShapeDtypeStruct((splits, 8, 2 * dq), jnp.float32),
        ),
        compiler_params=pltpu.CompilerParams(
            dimension_semantics=("parallel", "arbitrary"),
            vmem_limit_bytes=_VMEM_LIMIT),
    )(x, wstat, bstat)

    # ---- Fold: BN stats + kTv folded into an effective weight (tiny jnp) ----
    S = jnp.sum(s_part, axis=0)                      # (2dq, dq+out)
    colsum = jnp.sum(qsum_part, axis=0)[0]           # (2dq,)
    ktv = S[:dq, dq:]                                # k.T @ v      (dq, out)
    gram = S[dq:, :dq]                               # q.T @ q      (dq, dq)
    qsum = colsum[dq:].reshape(1, dq)                # sum_i q_i    (1, dq)

    inv_n = jnp.float32(1.0 / n)
    qbar = qsum * inv_n
    mean = qbar @ ktv                                           # (1, out)
    gram_c = gram - qsum.T @ qbar                               # centered Gram
    var = jnp.maximum(jnp.sum((gram_c @ ktv) * ktv, axis=0,
                              keepdims=True) * inv_n, 0.0)      # biased variance
    scale = packed["gamma"] * jax.lax.rsqrt(var + BN_EPS)
    shift = packed["beta"] - mean * scale

    ktv_s = ktv * scale                                # fold BN scale into columns
    w_at = packed["wq_s"] @ ktv_s                      # (in_dim, out)
    b_at = packed["bq_s"] @ ktv_s + shift              # (1, out)

    # ---- Pass B: single matmul, lane-dense packed output when possible ----
    if n % 4 == 0:
        pack = 4          # view x as (N/4, 4*in_dim), out as (N/4, 4*out_dim=128)
    else:
        pack = 1          # TODO(synk): lane-dense output needs N % 4 == 0.
    eye = jnp.eye(pack, dtype=jnp.float32)
    w_b = jnp.concatenate([jnp.kron(eye, w_at), jnp.kron(eye, packed["wr"])],
                          axis=1)                               # (pack*in, 2*pack*out)
    b_b = jnp.concatenate([jnp.tile(b_at, (1, pack)),
                           jnp.tile(packed["br"], (1, pack))], axis=1)
    x_b = x.reshape(n // pack, pack * in_dim)                   # free row-major view
    half = pack * out_dim
    rows_b = n // pack
    tile_b = tile_n // pack

    out_b = pl.pallas_call(
        functools.partial(_out_kernel, half=half),
        grid=(pl.cdiv(rows_b, tile_b),),
        in_specs=[
            pl.BlockSpec((tile_b, pack * in_dim), lambda i: (i, 0)),
            pl.BlockSpec((pack * in_dim, 2 * half), lambda i: (0, 0)),
            pl.BlockSpec((1, 2 * half), lambda i: (0, 0)),
        ],
        out_specs=pl.BlockSpec((tile_b, half), lambda i: (i, 0)),
        out_shape=jax.ShapeDtypeStruct((rows_b, half), jnp.float32),
        compiler_params=pltpu.CompilerParams(
            dimension_semantics=("parallel",),
            vmem_limit_bytes=_VMEM_LIMIT),
    )(x_b, w_b, b_b)
    return out_b.reshape(n, out_dim)


def init_params(key, in_dim, out_dim):
    """Deterministic PyTorch-Linear-style init: U(-1/sqrt(fan_in), 1/sqrt(fan_in))."""
    dq = out_dim // 4
    bound = 1.0 / math.sqrt(in_dim)
    keys = jax.random.split(key, 8)

    def u(k, shape):
        return jax.random.uniform(k, shape, jnp.float32, -bound, bound)

    return {
        "wq": u(keys[0], (in_dim, dq)),      "bq": u(keys[1], (1, dq)),
        "wk": u(keys[2], (in_dim, dq)),      "bk": u(keys[3], (1, dq)),
        "wv": u(keys[4], (in_dim, out_dim)), "bv": u(keys[5], (1, out_dim)),
        "wr": u(keys[6], (in_dim, out_dim)), "br": u(keys[7], (1, out_dim)),
        "gamma": jnp.ones((1, out_dim), jnp.float32),
        "beta": jnp.zeros((1, out_dim), jnp.float32),
    }


def pack_params(p, out_dim):
    """One-time packing: fold 1/sqrt(dq) into q; column order [k | q_s | v] for pass A."""
    dq = out_dim // 4
    s = 1.0 / math.sqrt(dq)
    wq_s, bq_s = p["wq"] * s, p["bq"] * s
    wstat = jnp.concatenate([p["wk"], wq_s, p["wv"]], axis=1)
    bstat = jnp.concatenate([p["bk"], bq_s, p["bv"]], axis=1)
    return {"wstat": wstat, "bstat": bstat,
            "wq_s": wq_s, "bq_s": bq_s,
            "wr": p["wr"], "br": p["br"],
            "gamma": p["gamma"], "beta": p["beta"]}


def reference_forward(x, p):
    """Pure-JAX reference mirroring the PyTorch forward (training-mode BN)."""
    q = x @ p["wq"] + p["bq"]
    k = x @ p["wk"] + p["bk"]
    v = x @ p["wv"] + p["bv"]
    energy = (q @ k.T) / math.sqrt(q.shape[-1])
    # softmax(energy) computed in the reference but unused (dead code) — omitted.
    at = energy @ v
    mean = at.mean(0, keepdims=True)
    var = ((at - mean) ** 2).mean(0, keepdims=True)
    at = (at - mean) / jnp.sqrt(var + BN_EPS) * p["gamma"] + p["beta"]
    at = jnp.maximum(at, 0.0)
    return (x @ p["wr"] + p["br"]) + at


if __name__ == "__main__":
    IN_DIM, OUT_DIM = 16, 32

    key = jax.random.PRNGKey(0)
    kp, kx = jax.random.split(key)
    params = init_params(kp, IN_DIM, OUT_DIM)
    packed = pack_params(params, OUT_DIM)

    # max_tile=64 exercises the multi-tile + 2-way-split reduction (N=256),
    # the masked partial tail tile (N=200), and the unpacked fallback (N=250).
    for n in (256, 200, 250):
        x = jax.random.normal(jax.random.fold_in(kx, n), (n, IN_DIM), jnp.float32)
        out = global_attention_head(x, packed, max_tile=64)
        out = jax.block_until_ready(out)

        ref = reference_forward(x, params)
        assert out.shape == (n, OUT_DIM)
        err = float(jnp.max(jnp.abs(out - ref)))
        assert jnp.allclose(out, ref, atol=2e-4, rtol=2e-4), \
            f"mismatch vs reference at N={n}, max abs err {err}"

    print("KERNEL_OK")
</pallas_src>

<mosaic_0001>
module attributes {stable_mosaic.version = 11 : i64} {
  func.func @_stats_kernel(%arg0: i32, %arg1: i32, %arg2: memref<64x16xf32, #tpu.memory_space<vmem>>, %arg3: memref<16x48xf32, #tpu.memory_space<vmem>>, %arg4: memref<1x48xf32, #tpu.memory_space<vmem>>, %arg5: memref<1x16x40xf32, #tpu.memory_space<vmem>>, %arg6: memref<1x8x16xf32, #tpu.memory_space<vmem>>) attributes {dimension_semantics = [#tpu.dimension_semantics<parallel>, #tpu.dimension_semantics<arbitrary>], iteration_bounds = array<i64: 2, 2>, scalar_prefetch = 0 : i64, scratch_operands = 0 : i64, tpu.core_type = #tpu.core_type<tc>, window_params = [{transform_indices = @transform_0, window_bounds = array<i64: 64, 16>}, {pipeline_mode = #tpu.pipeline_mode<synchronous>, transform_indices = @transform_1, window_bounds = array<i64: 16, 48>}, {pipeline_mode = #tpu.pipeline_mode<synchronous>, transform_indices = @transform_2, window_bounds = array<i64: 1, 48>}, {transform_indices = @transform_3, window_bounds = array<i64: 1, 16, 40>}, {transform_indices = @transform_4, window_bounds = array<i64: 1, 8, 16>}]} {
    %c0_i32 = arith.constant 0 : i32
    %0 = arith.cmpi eq, %arg1, %c0_i32 : i32
    %1 = arith.extui %0 : i1 to i32
    %c0_i32_0 = arith.constant 0 : i32
    %2 = arith.cmpi ne, %1, %c0_i32_0 : i32
    scf.if %2 {
      %cst_20 = arith.constant 0.000000e+00 : f32
      %23 = vector.broadcast %cst_20 : f32 to vector<1x16x40xf32>
      %c0_21 = arith.constant 0 : index
      %c0_22 = arith.constant 0 : index
      %c0_23 = arith.constant 0 : index
      %24 = vector.load %arg5[%c0_21, %c0_22, %c0_23] : memref<1x16x40xf32, #tpu.memory_space<vmem>>, vector<1x16x40xf32>
      tpu.vector_store %arg5[%c0_21, %c0_22, %c0_23], %23 {strides = array<i32>} : memref<1x16x40xf32, #tpu.memory_space<vmem>>, vector<1x16x40xf32>,
      %cst_24 = arith.constant 0.000000e+00 : f32
      %25 = vector.broadcast %cst_24 : f32 to vector<1x8x16xf32>
      %c0_25 = arith.constant 0 : index
      %c0_26 = arith.constant 0 : index
      %c0_27 = arith.constant 0 : index
      %26 = vector.load %arg6[%c0_25, %c0_26, %c0_27] : memref<1x8x16xf32, #tpu.memory_space<vmem>>, vector<1x8x16xf32>
      tpu.vector_store %arg6[%c0_25, %c0_26, %c0_27], %25 {strides = array<i32>} : memref<1x8x16xf32, #tpu.memory_space<vmem>>, vector<1x8x16xf32>,
    } else {
    }
    %c0 = arith.constant 0 : index
    %c0_1 = arith.constant 0 : index
    %3 = vector.load %arg2[%c0, %c0_1] : memref<64x16xf32, #tpu.memory_space<vmem>>, vector<64x16xf32>
    %c0_2 = arith.constant 0 : index
    %c0_3 = arith.constant 0 : index
    %4 = vector.load %arg3[%c0_2, %c0_3] : memref<16x48xf32, #tpu.memory_space<vmem>>, vector<16x48xf32>
    %cst = arith.constant dense<0.000000e+00> : vector<64x48xf32>
    %5 = tpu.matmul %3, %4, %cst {dimension_numbers = #tpu.dot_dimension_numbers<[1], [0], [0], [1], [0, 0, 1, 1], [], []>} : vector<64x16xf32>, vector<16x48xf32>, vector<64x48xf32> -> vector<64x48xf32>
    %c0_4 = arith.constant 0 : index
    %c0_5 = arith.constant 0 : index
    %6 = vector.load %arg4[%c0_4, %c0_5] : memref<1x48xf32, #tpu.memory_space<vmem>>, vector<1x48xf32>
    %7 = vector.broadcast %6 : vector<1x48xf32> to vector<64x48xf32>
    %8 = arith.addf %5, %7 : vector<64x48xf32>
    %9 = vector.extract_strided_slice %8 {offsets = [0, 0], sizes = [64, 16], strides = [1, 1]} : vector<64x48xf32> to vector<64x16xf32>
    %10 = vector.extract_strided_slice %8 {offsets = [0, 8], sizes = [64, 40], strides = [1, 1]} : vector<64x48xf32> to vector<64x40xf32>
    %c0_6 = arith.constant 0 : index
    %c0_7 = arith.constant 0 : index
    %c0_8 = arith.constant 0 : index
    %11 = vector.load %arg5[%c0_6, %c0_7, %c0_8] : memref<1x16x40xf32, #tpu.memory_space<vmem>>, vector<1x16x40xf32>
    %cst_9 = arith.constant dense<0.000000e+00> : vector<16x40xf32>
    %12 = tpu.matmul %9, %10, %cst_9 {dimension_numbers = #tpu.dot_dimension_numbers<[0], [0], [1], [1], [0, 1, 1, 1], [], []>} : vector<64x16xf32>, vector<64x40xf32>, vector<16x40xf32> -> vector<16x40xf32>
    %13 = vector.shape_cast %12 : vector<16x40xf32> to vector<1x16x40xf32>
    %14 = arith.addf %11, %13 : vector<1x16x40xf32>
    %c0_10 = arith.constant 0 : index
    %c0_11 = arith.constant 0 : index
    %c0_12 = arith.constant 0 : index
    %15 = vector.load %arg5[%c0_10, %c0_11, %c0_12] : memref<1x16x40xf32, #tpu.memory_space<vmem>>, vector<1x16x40xf32>
    tpu.vector_store %arg5[%c0_10, %c0_11, %c0_12], %14 {strides = array<i32>} : memref<1x16x40xf32, #tpu.memory_space<vmem>>, vector<1x16x40xf32>,
    %c0_13 = arith.constant 0 : index
    %c0_14 = arith.constant 0 : index
    %c0_15 = arith.constant 0 : index
    %16 = vector.load %arg6[%c0_13, %c0_14, %c0_15] : memref<1x8x16xf32, #tpu.memory_space<vmem>>, vector<1x8x16xf32>
    %cst_16 = arith.constant dense<0.000000e+00> : vector<16xf32>
    %17 = vector.multi_reduction <add>, %9, %cst_16 [0] : vector<64x16xf32> to vector<16xf32>
    %18 = vector.shape_cast %17 : vector<16xf32> to vector<1x16xf32>
    %19 = vector.shape_cast %18 : vector<1x16xf32> to vector<1x1x16xf32>
    %20 = vector.broadcast %19 : vector<1x1x16xf32> to vector<1x8x16xf32>
    %21 = arith.addf %16, %20 : vector<1x8x16xf32>
    %c0_17 = arith.constant 0 : index
    %c0_18 = arith.constant 0 : index
    %c0_19 = arith.constant 0 : index
    %22 = vector.load %arg6[%c0_17, %c0_18, %c0_19] : memref<1x8x16xf32, #tpu.memory_space<vmem>>, vector<1x8x16xf32>
    tpu.vector_store %arg6[%c0_17, %c0_18, %c0_19], %21 {strides = array<i32>} : memref<1x8x16xf32, #tpu.memory_space<vmem>>, vector<1x8x16xf32>,
    return
  }
  func.func @transform_0(%arg0: i32, %arg1: i32) -> (i32, i32) {
    %c2_i32 = arith.constant 2 : i32
    %0 = arith.muli %arg0, %c2_i32 : i32
    %1 = arith.addi %0, %arg1 : i32
    %c0_i32 = arith.constant 0 : i32
    %c0_i32_0 = arith.constant 0 : i32
    return %1, %c0_i32 : i32, i32
  }
  func.func @transform_1(%arg0: i32, %arg1: i32) -> (i32, i32) {
    %c0_i32 = arith.constant 0 : i32
    %c0_i32_0 = arith.constant 0 : i32
    %c0_i32_1 = arith.constant 0 : i32
    return %c0_i32, %c0_i32_0 : i32, i32
  }
  func.func @transform_2(%arg0: i32, %arg1: i32) -> (i32, i32) {
    %c0_i32 = arith.constant 0 : i32
    %c0_i32_0 = arith.constant 0 : i32
    %c0_i32_1 = arith.constant 0 : i32
    return %c0_i32, %c0_i32_0 : i32, i32
  }
  func.func @transform_3(%arg0: i32, %arg1: i32) -> (i32, i32, i32) {
    %c0_i32 = arith.constant 0 : i32
    %c0_i32_0 = arith.constant 0 : i32
    %c0_i32_1 = arith.constant 0 : i32
    return %arg0, %c0_i32, %c0_i32_0 : i32, i32, i32
  }
  func.func @transform_4(%arg0: i32, %arg1: i32) -> (i32, i32, i32) {
    %c0_i32 = arith.constant 0 : i32
    %c0_i32_0 = arith.constant 0 : i32
    %c0_i32_1 = arith.constant 0 : i32
    return %arg0, %c0_i32, %c0_i32_0 : i32, i32, i32
  }
}

</mosaic_0001>

<bundles_post_ra>
// kernel: tpu_custom_call.1
= control target key start
LH: loop header
LB: loop body
LE: loop exit
PB: predicated region body
PF: predicated region fallthrough
CT: control target
= control target key end

     0   :  { %s1081_s0 = inlined_call_operand.vmem [shape: f32[256,16], index: 0, kind: input, shape index: {}]   ;;  %s1082_s1 = inlined_call_operand.vmem [shape: f32[16,48], index: 1, kind: input, shape index: {}]   ;;  %s1083_s2 = inlined_call_operand.vmem [shape: f32[1,48], index: 2, kind: input, shape index: {}]   ;;  %s1084_s3 = inlined_call_operand.hbm [shape: f32[2,16,40], index: 3, kind: output, shape index: {0}]   ;;  %s1085_s4 = inlined_call_operand.hbm [shape: f32[2,8,16], index: 4, kind: output, shape index: {1}]  }
   0x1   :  { %1086 = sst [smem:[#allocation8_spill]] %s1081_s0 }
   0x2   :  { %1087 = sst [smem:[#allocation9_spill]] %s1082_s1 }
   0x3   :  { %1088 = sst [smem:[#allocation10_spill]] %s1083_s2 }
   0x4   :  { %10 = vsyncpa [#allocation3], 0 }
   0x5   :  { %12 = vsyncpa [#allocation3 + $0x1], 0 }
   0x6   :  { %13 = vsyncpa [#allocation5], 0 }
   0x7   :  { %15 = vsyncpa [#allocation5 + $0x1], 0  ;;  %s892_s15 = smov 0   ;;  %s894_s16 = smov 0  }
   0x8   :  { %s896_s17 = smov 0   ;;  %s898_s18 = smov 0  }
   0x9   :  { %s900_s19 = smov 0   ;;  %s902_s20 = smov 0  }
   0xa   :  { %s904_s21 = smov 0   ;;  %s906_s22 = smov 0  }
   0xb LB: > { %s590_s23 = sadd.s32 4294967295, %s861_s22   ;;  %s591_s24 = sadd.s32 4294967294, %s861_s22   ;;  %s861_s22 = sphi %s906_s22, %s21_s22   ;;  %s857_s21 = sphi %s904_s21, %s1100_s21   ;;  %s853_s20 = sphi %s902_s20, %s1099_s20   ;;  %s849_s19 = sphi %s900_s19, %s1098_s19   ;;  %s845_s18 = sphi %s898_s18, %s1097_s18   ;;  %s841_s17 = sphi %s896_s17, %s1096_s17   ;;  %s837_s16 = sphi %s894_s16, %s1095_s16   ;;  %s833_s15 = sphi %s892_s15, %s1094_s15  }
   0xc   : > { %s30_s25 = sadd.s32 1, %s853_s20  ;;  %s33_s26 = sadd.s32 1, %s857_s21 }
   0xd   : > { %p31_p0 = scmp.ge.s32.totalorder %s30_s25, 2  ;;  %p122_p1 = scmp.ne.s32.totalorder %s841_s17, %s837_s16 }
   0xe   : > { %p123_p2 = scmp.eq.s32.totalorder %s590_s23, 3  ;;  %p128_p4 = scmp.ne.s32.totalorder %s837_s16, %s833_s15 }
   0xf   : > { %s1102_s25 = smov (%p31_p0, %s30_s25), 0  ;;  %s1104_s26 = smov (!%p31_p0, %s33_s26), %s857_s21 }
  0x10   : > { %p941_p3 = por %p123_p2, %p122_p1  ;;  %p35_p5 = scmp.ge.s32.totalorder %s1104_s26, 2 }
  0x11   : > { %p129_p6 = scmp.eq.s32.totalorder %s591_s24, 3  ;;  %p596_p7 = scmp.ge.s32.totalorder %s861_s22, 1 }
  0x12   : > { %p192_p8 = scmp.lt.s32.totalorder %s861_s22, 5  ;;  %s1106_s26 = smov (%p35_p5, %s1104_s26), 0 }
  0x13   : > { %p951_p9 = por %p129_p6, %p128_p4  ;;  %s109_s29 = ssub.s32 %s857_s21, %s1106_s26 }
  0x14   : > { %p193_p10 = pnand %p596_p7, %p192_p8  ;;  %s112_s30 = sadd.s32 1, %s841_s17 }
  0x15   : > { %p110_p11 = scmp.eq.s32.totalorder %s109_s29, 0  ;;  %s962_s6 = sand.u32 (!%p193_p10), 1, %s837_s16  }
  0x16   : > { %196 = sbr.rel (%p193_p10) target bundleno = 477 (0x1dd), region = 32  ;;  %s599_s7 = sshll.u32 (!%p193_p10), %s849_s19, 1 }
  0x17   : > { %s959_s5 = scalar_select %p110_p11, %s841_s17, %s112_s30  }
  0x18   : > { %s597_s8 = sshll.u32 (!%p193_p10), %s962_s6, 4  ;;  %s598_s9 = sshll.u32 (!%p193_p10), %s962_s6, 3 }
  0x19   : > { %s226_s10 = sadd.s32 (!%p193_p10), %s845_s18, %s599_s7  ;;  %s1091_s0 = sld [smem:[#allocation8_spill]] (!%p193_p10) }
  0x1a   : > { %s600_s11 = sshll.u32 (!%p193_p10), %s226_s10, 3  ;;  %s973_s24 = scalar_lea.vmem (!%p193_p10), [#allocation2], %s597_s8 }
  0x1b   : > { %p228_p12 = scmp.lt.s32.totalorder %s600_s11, 31  ;;  %s975_s29 = scalar_lea.vmem [#allocation4], %s598_s9 }
  0x1c   : > { %p602_p13 = scmp.ne.s32.totalorder %s845_s18, 0 }
  0x1d   : > { %s1108_s11 = smov (!%p228_p12, %s600_s11), 31 }
  0x1e   : > { %s601_s12 = sshll.u32 %s1108_s11, 3  ;;  %238 = sbr.rel (%p602_p13) target bundleno = 39 (0x27), region = 36 }
  0x1f   : > { %s971_s23 = scalar_lea.vmem %s1091_s0, %s601_s12 }
  0x23   : > { %vm239_vm0 = vcmask 326656   ;;  %vm242_vm1 = vcmask 130048   ;;  %v863_v0 = vmov 0.0  }
  0x24   : > { %240 = vst.msk [vmem:[%s973_s24] sm:$0xff] %vm239_vm0, %v863_v0 }
  0x25   : > { %241 = vst.msk [vmem:[%s973_s24 + $0x8] sm:$0xff] %vm239_vm0, %v863_v0 }
  0x26   : > { %243 = vst.msk [vmem:[%s975_s29] sm:$0xff] %vm242_vm1, %v863_v0 }
  0x27 PF: > { %s1092_s1 = sld [smem:[#allocation9_spill]]  ;;  %v244_v3 = vld [vmem:[%s971_s23] sm:$0xff]  ;;  %vm258_vm2 = vcmask 130048   ;;  %v247_v4 = vld [vmem:[%s971_s23 + $0x18] sm:$0xff]  ;;  %v250_v5 = vld [vmem:[%s971_s23 + $0x30] sm:$0xff]  ;;  %s864_s11 = smov 120  }
  0x28   : > { %v245_v6 = vld [vmem:[%s971_s23 + $0x8] sm:$0xff]  ;;  %v248_v7 = vld [vmem:[%s971_s23 + $0x20] sm:$0xff]  ;;  %v251_v8 = vld [vmem:[%s971_s23 + $0x38] sm:$0xff]  ;;  %s1093_s2 = sld [smem:[#allocation10_spill]]  ;;  %vm390_vm3 = vcmask 523264   ;;  %s617_s12 = sshll.u32 %s849_s19, 3 }
  0x29   : > { %v246_v9 = vld [vmem:[%s971_s23 + $0x10] sm:$0xff]  ;;  %v249_v10 = vld [vmem:[%s971_s23 + $0x28] sm:$0xff]  ;;  %s482_s23 = scalar_lea.hbm %s1085_s4, %s617_s12  ;;  %s484_s30 = sshll.u32 %s975_s29, 4  ;;  %s485_s30 = int_to_ptr.vmem [resolvable:$true] %s484_s30 }
  0x2a   : > { %s486_s7 = sshll.u32 %s482_s23, 4  ;;  %s455_s18 = scalar_lea.sflag [#allocation5], %s962_s6  ;;  %s487_s7 = int_to_ptr.hbm [resolvable:$true] %s486_s7 }
  0x2b   : > { %s749_s8 = sshra.s32 %s487_s7, 4  ;;  %s755_s0 = scalar_lea.hbm %s1085_s4, 16  ;;  %s750_s8 = int_to_ptr.hbm [resolvable:$true] %s749_s8 }
  0x2c   : > { %s751_s9 = scalar_lea.hbm %s750_s8, 8  ;;  %p756_p4 = scmp.lt.s32.totalorder %s750_s8, %s1085_s4 }
  0x2d   : > { %v253_v1 = vld [vmem:[%s1092_s1 + $0x8] sm:$0xff]  ;;  %v252_v2 = vld [vmem:[%s1092_s1] sm:$0xff]  ;;  %p752_p0 = scmp.ne.s32.totalorder %s750_s8, %s751_s9  ;;  %p757_p5 = scmp.lt.s32.totalorder %s755_s0, %s751_s9 }
  0x2e   : > { %297 = vmatpush.msra.mxu0 %v253_v1  ;;  %621 = vmatpush.msra.mxu2 %v253_v1  ;;  %v734_v11 = vld [vmem:[%s1093_s2] ss:$0 sm:$0xff] }
  0x2f   : > { %622 = vmatpush.msra.mxu3 %v253_v1  ;;  %v425_v52 = vld [vmem:[%s975_s29] sm:$0xff]  ;;  %p753_p1 = pnand %p752_p0, %p941_p3  ;;  %p758_p6 = por %p757_p5, %p756_p4 }
  0x30   : > { %298 = vmatpush.msra.mxu0 %v252_v2  ;;  %623 = vmatpush.msra.mxu2 %v252_v2 }
  0x31   : > { %624 = vmatpush.msra.mxu3 %v252_v2  ;;  %603 = vmatmul.msk.f32.vlgmr.msra.gmra.mxu0 %vm258_vm2, %v244_v3  ;;  %p754_p2 = pneg %p753_p1 }
  0x32   : > { %606 = vmatmul.msk.f32.vlgmr.msra.gmra.mxu2 %vm258_vm2, %v247_v4  ;;  %609 = vmatmul.msk.f32.vlgmr.msra.gmra.mxu3 %vm258_vm2, %v250_v5 }
  0x33   : > { %p759_p7 = pnand %p758_p6, %p754_p2 }
  0x39   : > { %604 = vmatmul.msk.f32.gmra.mxu0 %vm258_vm2, %v245_v6 }
  0x3a   : > { %607 = vmatmul.msk.f32.gmra.mxu2 %vm258_vm2, %v248_v7  ;;  %610 = vmatmul.msk.f32.gmra.mxu3 %vm258_vm2, %v251_v8 }
  0x41   : > { %605 = vmatmul.msk.f32.gmra.mxu0 %vm258_vm2, %v246_v9 }
  0x42   : > { %608 = vmatmul.msk.f32.gmra.mxu2 %vm258_vm2, %v249_v10 }
  0xae   : > { %v300_v12 = vpop.f32.mrf.mxu0 }
  0xaf   : > { %v301_v13 = vadd.f32 %v734_v11, %v300_v12 }
  0xb1   : > { %326 = vxpose.xlu2.b32.start [1/8] (short) (narrow) %v301_v13, 16  ;;  %v426_v25 = vsel %vm258_vm2, %v301_v13, 0.0 }
  0xb5   : > { %v309_v14 = vpop.f32.mrf.mxu2  ;;  %v318_v15 = vpop.f32.mrf.mxu3 }
  0xb6   : > { %v303_v16 = vpop.f32.mrf.mxu0  ;;  %v319_v18 = vadd.f32 %v734_v11, %v318_v15  ;;  %v310_v19 = vadd.f32 %v734_v11, %v309_v14 }
  0xb7   : > { %v304_v17 = vadd.f32 %v734_v11, %v303_v16 }
  0xb8   : > { %v431_v33 = vsel %vm258_vm2, %v310_v19, 0.0  ;;  %v437_v43 = vsel %vm258_vm2, %v319_v18, 0.0 }
  0xb9   : > { %327 = vxpose.xlu2.b32.cont [2/8] (short) (narrow) %v304_v17, 16  ;;  %v427_v20 = vsel %vm258_vm2, %v304_v17, 0.0  ;;  %v729_v42 = vpack.i.bf16 %v301_v13, %v304_v17 }
  0xba   : > { %v428_v28 = vadd.f32 %v427_v20, %v426_v25 }
  0xbd   : > { %v312_v21 = vpop.f32.mrf.mxu2  ;;  %v321_v22 = vpop.f32.mrf.mxu3 }
  0xbe   : > { %v322_v23 = vadd.f32 %v734_v11, %v321_v22  ;;  %v306_v24 = vpop.f32.mrf.mxu0  ;;  %v313_v26 = vadd.f32 %v734_v11, %v312_v21 }
  0xbf   : > { %v307_v27 = vadd.f32 %v734_v11, %v306_v24 }
  0xc0   : > { %v714_v29 = vpack.i.bf16 %v319_v18, %v322_v23  ;;  %v433_v34 = vsel %vm258_vm2, %v313_v26, 0.0  ;;  %v439_v45 = vsel %vm258_vm2, %v322_v23, 0.0 }
  0xc1   : > { %v429_v30 = vsel %vm258_vm2, %v307_v27, 0.0  ;;  %328 = vxpose.xlu2.b32.cont [3/8] (short) (narrow) %v307_v27, 16  ;;  %v724_v31 = vpack.i.bf16 %v307_v27, %v310_v19 }
  0xc2   : > { %v430_v32 = vadd.f32 %v429_v30, %v428_v28  ;;  %715 = vrot.lane.b32.xlu0 %v714_v29, %s864_s11 }
  0xc3   : > { %725 = vrot.lane.b32.xlu1 %v724_v31, %s864_s11 }
  0xc4   : > { %v432_v35 = vadd.f32 %v431_v33, %v430_v32 }
  0xc5   : > { %v315_v36 = vpop.f32.mrf.mxu2 }
  0xc6   : > { %v316_v37 = vadd.f32 %v734_v11, %v315_v36  ;;  %v434_v38 = vadd.f32 %v433_v34, %v432_v35 }
  0xc8   : > { %v435_v39 = vsel %vm258_vm2, %v316_v37, 0.0  ;;  %v719_v40 = vpack.i.bf16 %v313_v26, %v316_v37 }
  0xc9   : > { %v436_v41 = vadd.f32 %v435_v39, %v434_v38  ;;  %329 = vxpose.xlu2.b32.cont [4/8] (short) (narrow) %v310_v19, 16 }
  0xca   : > { %720 = vrot.lane.b32.xlu0 %v719_v40, %s864_s11 }
  0xcb   : > { %v438_v44 = vadd.f32 %v437_v43, %v436_v41  ;;  %730 = vrot.lane.b32.xlu1 %v729_v42, %s864_s11 }
  0xcd   : > { %v440_v46 = vadd.f32 %v439_v45, %v438_v44 }
  0xcf   : > { %v441_v47 = vrot.slane %v440_v46, 4 }
  0xd1   : > { %v442_v48 = vadd.f32 %v441_v47, %v440_v46  ;;  %330 = vxpose.xlu2.b32.cont [5/8] (short) (narrow) %v313_v26, 16 }
  0xd3   : > { %v443_v49 = vrot.slane %v442_v48, 2 }
  0xd5   : > { %v444_v50 = vadd.f32 %v443_v49, %v442_v48 }
  0xd7   : > { %v445_v51 = vrot.slane %v444_v50, 1 }
  0xd9   : > { %331 = vxpose.xlu2.b32.cont [6/8] (short) (narrow) %v316_v37, 16  ;;  %v446_v53 = vadd.f32 %v445_v51, %v444_v50 }
  0xdb   : > { %v447_v54 = vadd.f32 %v446_v53, %v425_v52 }
  0xdd   : > { %448 = vst.msk [vmem:[%s975_s29] sm:$0xff] %vm258_vm2, %v447_v54 }
  0xe1   : > { %332 = vxpose.xlu2.b32.cont [7/8] (short) (narrow) %v319_v18, 16 }
  0xe9   : > { %333 = vxpose.xlu2.b32.end [8/8] (short) (narrow) %v322_v23, 16 }
 0x134   : > { %v716_v55 = vpop.permute.xlu0 %715 }
 0x135   : > { %v717_v56 = vunpack.i.l.bf16 %v716_v55  ;;  %v718_v57 = vunpack.i.h.bf16 %v716_v55  ;;  %v726_v58 = vpop.permute.xlu1 %725 }
 0x136   : > { %v727_v62 = vunpack.i.l.bf16 %v726_v58  ;;  %v728_v0 = vunpack.i.h.bf16 %v726_v58 }
 0x137   : > { %405 = vmatpush.msra.mxu1 %v717_v56  ;;  %625 = vmatpush.msrb.mxu3 %v717_v56 }
 0x139   : > { %406 = vmatpush.msra.mxu1 %v718_v57  ;;  %626 = vmatpush.msrb.mxu3 %v718_v57 }
 0x13c   : > { %v721_v59 = vpop.permute.xlu0 %720 }
 0x13d   : > { %v723_v60 = vunpack.i.h.bf16 %v721_v59  ;;  %v722_v61 = vunpack.i.l.bf16 %v721_v59  ;;  %v731_v63 = vpop.permute.xlu1 %730 }
 0x13e   : > { %v732_v1 = vunpack.i.l.bf16 %v731_v63  ;;  %v733_v2 = vunpack.i.h.bf16 %v731_v63 }
 0x13f   : > { %407 = vmatpush.msra.mxu1 %v722_v61  ;;  %627 = vmatpush.msrb.mxu3 %v722_v61 }
 0x141   : > { %408 = vmatpush.msra.mxu1 %v723_v60  ;;  %628 = vmatpush.msrb.mxu3 %v723_v60 }
 0x143   : > { %409 = vmatpush.msra.mxu1 %v727_v62  ;;  %629 = vmatpush.msrb.mxu3 %v727_v62 }
 0x145   : > { %410 = vmatpush.msra.mxu1 %v728_v0  ;;  %630 = vmatpush.msrb.mxu3 %v728_v0 }
 0x147   : > { %411 = vmatpush.msra.mxu1 %v732_v1  ;;  %631 = vmatpush.msrb.mxu3 %v732_v1 }
 0x149   : > { %412 = vmatpush.msra.mxu1 %v733_v2  ;;  %632 = vmatpush.msrb.mxu3 %v733_v2 }
 0x14a   : > { %v342_v3 = vpop.trf.xlu2 }
 0x14b   : > { %611 = vmatmul.msk.f32.vlgmr.msra.gmra.mxu1 %vm390_vm3, %v342_v3 }
 0x152   : > { %v343_v4 = vpop.trf.xlu2 }
 0x153   : > { %612 = vmatmul.msk.f32.vlgmr.msrb.gmra.mxu3 %vm390_vm3, %v343_v4 }
 0x154   : > { %762 = shalt.err (!%p759_p7)
}
 0x155   : > { %634 = dma.vmem_to_hbm [thread:$0]  (%p941_p3), %s485_s30, 128, %s487_s7, %s455_s18   ;;  %v324_v5 = vld [vmem:[%s973_s24] sm:$0xff]  ;;  %vm422_vm4 = vcmask 326656   ;;  %v325_v8 = vld [vmem:[%s973_s24 + $0x8] sm:$0xff] }
 0x156   : > { %s620_s0 = sshll.u32 %s849_s19, 4  ;;  %s467_s12 = sshll.u32 %s973_s24, 4  ;;  %s468_s12 = int_to_ptr.vmem [resolvable:$true] %s467_s12 }
 0x157   : > { %s466_s29 = scalar_lea.hbm %s1084_s3, %s620_s0  ;;  %s450_s14 = scalar_lea.sflag [#allocation3], %s962_s6 }
 0x158   : > { %s469_s13 = sshll.u32 %s466_s29, 4  ;;  %s783_s18 = scalar_lea.hbm %s1084_s3, 32  ;;  %s470_s13 = int_to_ptr.hbm [resolvable:$true] %s469_s13 }
 0x159   : > { %s777_s23 = sshra.s32 %s470_s13, 4  ;;  %s778_s23 = int_to_ptr.hbm [resolvable:$true] %s777_s23 }
 0x15a   : > { %s779_s30 = scalar_lea.hbm %s778_s23, 16  ;;  %p784_p12 = scmp.lt.s32.totalorder %s778_s23, %s1084_s3 }
 0x15b   : > { %p780_p8 = scmp.ne.s32.totalorder %s778_s23, %s779_s30  ;;  %p785_p13 = scmp.lt.s32.totalorder %s783_s18, %s779_s30 }
 0x15d   : > { %p781_p10 = pnand %p780_p8, %p941_p3  ;;  %p786_p0 = por %p785_p13, %p784_p12 }
 0x15f   : > { %p782_p11 = pneg %p781_p10 }
 0x161   : > { %p787_p1 = pnand %p786_p0, %p782_p11 }
 0x1c8   : > { %v414_v6 = vpop.f32.mrf.mxu1 }
 0x1c9   : > { %v420_v7 = vadd.f32 %v414_v6, %v324_v5 }
 0x1cb   : > { %423 = vst.msk [vmem:[%s973_s24] sm:$0xff] %vm422_vm4, %v420_v7 }
 0x1d6   : > { %v417_v9 = vpop.f32.mrf.mxu3 }
 0x1d7   : > { %v421_v10 = vadd.f32 %v417_v9, %v325_v8 }
 0x1d9   : > { %424 = vst.msk [vmem:[%s973_s24 + $0x8] sm:$0xff] %vm422_vm4, %v421_v10 }
 0x1da   : > { %790 = shalt.err (!%p787_p1)
}
 0x1db   : > { %s865_s6 = smov 128   ;;  %s866_s24 = smov 8  }
 0x1dc   : > { %633 = dma.vmem_to_hbm [thread:$0]  (%p941_p3), %s468_s12, 256, %s470_s13, %s450_s14, %s865_s6, %s865_s6, %s866_s24  }
 0x1dd PF: > { %p644_p2 = scmp.ge.s32.totalorder %s861_s22, 2  ;;  %s498_s10 = sand.u32 1, %s833_s15  }
 0x1de   : > { %s499_s11 = scalar_lea.sflag [#allocation3], %s498_s10 }
 0x1df   : > { %p638_p4 = pnand %p644_p2, %p951_p9 }
 0x1e1   : > { %p639_p5 = pneg %p638_p4 }
 0x1e3   : > { %824 = dma.done.wait (%p639_p5), %s499_s11, 256  }
 0x1e4   : > { %826 = vsyncadd (%p639_p5), %s499_s11, 4294967040  ;;  %s509_s0 = scalar_lea.sflag [#allocation5], %s498_s10 }
 0x1e5   : > { %828 = dma.done.wait (%p639_p5), %s509_s0, 128  }
 0x1e6   : > { %830 = vsyncadd (%p639_p5), %s509_s0, 4294967168  ;;  %s21_s22 = sadd.s32 1, %s861_s22   ;;  %s1094_s15 = smov %s837_s16 }
 0x1e7   : > { %p18_p6 = scmp.ge.s32.totalorder %s21_s22, 6   ;;  %s1095_s16 = smov %s841_s17 }
 0x1e8   : > { %s1096_s17 = smov %s959_s5  ;;  %s1097_s18 = smov %s853_s20 }
 0x1e9   : > { %s1098_s19 = smov %s857_s21  ;;  %s1099_s20 = smov %s1102_s25 }
 0x1ea   : > { %s1100_s21 = smov %s1106_s26  ;;  %20 = sbr.rel (!%p18_p6) target bundleno = 11 (0xb), region = 88 }
 0x1ef   :  { %515 = vsyncpa [#allocation3], 1 }
 0x1f0   :  { %517 = vsyncpa [#allocation3 + $0x1], 1 }
 0x1f1   :  { %518 = vsyncpa [#allocation5], 1 }
 0x1f2   :  { %520 = vsyncpa [#allocation5 + $0x1], 1 }

</bundles_post_ra>
